<compile_context>
chip_gen: v5e
topology: v5e:2x2
jax: 0.10.0
libtpu: 0.0.40
codegen_flags: <defaults>
</compile_context>

<pallas_src>
import functools

import jax
import jax.numpy as jnp
from jax.experimental import pallas as pl
from jax.experimental.pallas import tpu as pltpu


def _ce_frames_kernel(preds_ref, gts_ref, ce_ref, *, ignore_index, total_t, t_tile):
    """Masked per-frame cross entropy in native (N, C, T) layout.

    preds_ref: (1, C, TT) logits tile (frames on lanes, classes on sublanes).
    gts_ref:   (1, 1, TT) int32 targets.
    ce_ref:    (1, 1, TT) f32 = -log_softmax(logits)[target]; 0 where ignored
               or past the real sequence length (ragged last tile).
    """
    logits = preds_ref[...].astype(jnp.float32)            # (1, C, TT)
    tgt = gts_ref[...]                                      # (1, 1, TT) int32
    _, c, tt = logits.shape

    # Numerically stable log-sum-exp over the class (sublane) axis.
    m = jnp.max(logits, axis=1, keepdims=True)              # (1, 1, TT)
    lse = jnp.log(jnp.sum(jnp.exp(logits - m), axis=1, keepdims=True)) + m

    # Gather the target logit via a one-hot compare along the class axis.
    cls = jax.lax.broadcasted_iota(jnp.int32, (1, c, tt), dimension=1)
    tgt_logit = jnp.sum(jnp.where(cls == tgt, logits, 0.0), axis=1, keepdims=True)

    ce = lse - tgt_logit                                     # (1, 1, TT)

    # Valid = not ignore_index AND inside the real sequence (ragged tail of the
    # last tile reads padded/stale data; the frame-index mask kills it).
    frame = (pl.program_id(1) * t_tile
             + jax.lax.broadcasted_iota(jnp.int32, (1, 1, tt), dimension=2))
    valid = (tgt != ignore_index) & (frame < total_t)
    ce_ref[...] = jnp.where(valid, ce, 0.0)


def action_segmentation_loss(preds, gts, sim_index=None, *,
                             ignore_index=255, ce_weight=1.0, focal_weight=1.0,
                             focal_gamma=2.0, focal_alpha=0.25):
    """Pallas-backed ActionSegmentationLoss.forward (default CE + Focal).

    preds: (N, C, T) float; gts: (N, T) int; sim_index: (N, C', T), unused
    because gstmse=False in the default configuration.
    """
    # TODO(synk): TMSE / GaussianSimilarityTMSE branches (tmse/gstmse flags) and
    # the optional per-class CE `weight` are not implemented (disabled/None by default).
    del sim_index
    N, C, T = preds.shape

    # Frame tile: lane-dense (multiple of 128), sized by bytes so one logits
    # tile stays <= ~4 MiB; double-buffered this fits the shared 32 MiB scoped
    # VMEM budget on v5e/v6e/v7x.  Small T (< 128) uses the full extent.
    itemsize = jnp.dtype(preds.dtype).itemsize
    max_tile_bytes = 4 * 1024 * 1024
    if T < 128:
        t_tile = T
    else:
        cap = (max_tile_bytes // (C * itemsize)) // 128 * 128
        t_tile = max(128, min(cap, (T // 128) * 128))
    grid_t = pl.cdiv(T, t_tile)

    gts_i32 = gts.reshape(N, 1, T).astype(jnp.int32)

    per_frame_ce = pl.pallas_call(
        functools.partial(_ce_frames_kernel, ignore_index=ignore_index,
                          total_t=T, t_tile=t_tile),
        out_shape=jax.ShapeDtypeStruct((N, 1, T), jnp.float32),
        grid_spec=pltpu.PrefetchScalarGridSpec(
            num_scalar_prefetch=0,
            grid=(N, grid_t),
            in_specs=[
                pl.BlockSpec((1, C, t_tile), lambda n, t: (n, 0, t)),
                pl.BlockSpec((1, 1, t_tile), lambda n, t: (n, 0, t)),
            ],
            out_specs=pl.BlockSpec((1, 1, t_tile), lambda n, t: (n, 0, t)),
        ),
        compiler_params=pltpu.CompilerParams(
            dimension_semantics=("parallel", "parallel"),
            vmem_limit_bytes=32 * 1024 * 1024,
        ),
    )(preds, gts_i32)

    # Tiny f32 epilogue: mean over valid frames, then the focal term from ce.
    n_valid = jnp.sum((gts != ignore_index).astype(jnp.float32))
    ce = jnp.sum(per_frame_ce) / n_valid
    # FocalLoss: logpt = -ce; pt = exp(logpt); loss = -((1-pt)^g)*(alpha*logpt)/N
    focal = focal_alpha * ce * (1.0 - jnp.exp(-ce)) ** focal_gamma / N
    return ce_weight * ce + focal_weight * focal


def _reference_loss(preds, gts, ignore_index=255, gamma=2.0, alpha=0.25):
    # Pure-JAX mirror of the PyTorch forward (CE + Focal, default weights).
    N, C, T = preds.shape
    logp = jax.nn.log_softmax(preds.astype(jnp.float32), axis=1)      # (N, C, T)
    valid = gts != ignore_index
    y_safe = jnp.where(valid, gts, 0).astype(jnp.int32)
    tgt_logp = jnp.take_along_axis(logp, y_safe[:, None, :], axis=1)[:, 0, :]
    ce = jnp.sum(jnp.where(valid, -tgt_logp, 0.0)) / jnp.sum(valid)
    focal = alpha * ce * (1.0 - jnp.exp(-ce)) ** gamma / N
    return ce + focal


if __name__ == "__main__":
    key = jax.random.PRNGKey(0)
    k1, k2, k3 = jax.random.split(key, 3)
    N, C, T = 2, 16, 64
    preds = jax.random.normal(k1, (N, C, T), dtype=jnp.float32)
    gts = jax.random.randint(k2, (N, T), 0, C, dtype=jnp.int32)
    gts = gts.at[0, :5].set(255)  # exercise ignore_index masking
    sim_index = jax.random.normal(k3, (N, 3, T), dtype=jnp.float32)

    loss = action_segmentation_loss(preds, gts, sim_index)
    loss = jax.block_until_ready(loss)

    ref = _reference_loss(preds, gts)
    assert jnp.allclose(loss, ref, rtol=1e-5, atol=1e-5), (loss, ref)

    print("KERNEL_OK")
</pallas_src>

<mosaic_0001>
module attributes {stable_mosaic.version = 11 : i64} {
  func.func @_ce_frames_kernel(%arg0: i32, %arg1: i32, %arg2: memref<1x16x64xf32, #tpu.memory_space<vmem>>, %arg3: memref<1x1x64xi32, #tpu.memory_space<vmem>>, %arg4: memref<1x1x64xf32, #tpu.memory_space<vmem>>) attributes {dimension_semantics = [#tpu.dimension_semantics<parallel>, #tpu.dimension_semantics<parallel>], iteration_bounds = array<i64: 2, 1>, scalar_prefetch = 0 : i64, scratch_operands = 0 : i64, tpu.core_type = #tpu.core_type<tc>, window_params = [{transform_indices = @transform_0, window_bounds = array<i64: 1, 16, 64>}, {transform_indices = @transform_1, window_bounds = array<i64: 1, 1, 64>}, {transform_indices = @transform_2, window_bounds = array<i64: 1, 1, 64>}]} {
    %c0 = arith.constant 0 : index
    %c0_0 = arith.constant 0 : index
    %c0_1 = arith.constant 0 : index
    %0 = vector.load %arg2[%c0, %c0_0, %c0_1] : memref<1x16x64xf32, #tpu.memory_space<vmem>>, vector<1x16x64xf32>
    %c0_2 = arith.constant 0 : index
    %c0_3 = arith.constant 0 : index
    %c0_4 = arith.constant 0 : index
    %1 = vector.load %arg3[%c0_2, %c0_3, %c0_4] : memref<1x1x64xi32, #tpu.memory_space<vmem>>, vector<1x1x64xi32>
    %cst = arith.constant dense<0xFF800000> : vector<1x64xf32>
    %2 = vector.multi_reduction <maximumf>, %0, %cst [1] : vector<1x16x64xf32> to vector<1x64xf32>
    %3 = vector.shape_cast %2 : vector<1x64xf32> to vector<1x1x64xf32>
    %4 = vector.broadcast %3 : vector<1x1x64xf32> to vector<1x16x64xf32>
    %5 = arith.subf %0, %4 : vector<1x16x64xf32>
    %6 = math.exp %5 : vector<1x16x64xf32>
    %cst_5 = arith.constant dense<0.000000e+00> : vector<1x64xf32>
    %7 = vector.multi_reduction <add>, %6, %cst_5 [1] : vector<1x16x64xf32> to vector<1x64xf32>
    %8 = vector.shape_cast %7 : vector<1x64xf32> to vector<1x1x64xf32>
    %9 = math.log %8 : vector<1x1x64xf32>
    %10 = arith.addf %9, %3 : vector<1x1x64xf32>
    %11 = tpu.iota {dimensions = array<i32: 1>} : vector<1x16x64xi32>
    %12 = vector.broadcast %1 : vector<1x1x64xi32> to vector<1x16x64xi32>
    %13 = arith.cmpi eq, %11, %12 : vector<1x16x64xi32>
    %cst_6 = arith.constant 0.000000e+00 : f32
    %14 = vector.broadcast %cst_6 : f32 to vector<1x16x64xf32>
    %15 = arith.select %13, %0, %14 : vector<1x16x64xi1>, vector<1x16x64xf32>
    %cst_7 = arith.constant dense<0.000000e+00> : vector<1x64xf32>
    %16 = vector.multi_reduction <add>, %15, %cst_7 [1] : vector<1x16x64xf32> to vector<1x64xf32>
    %17 = vector.shape_cast %16 : vector<1x64xf32> to vector<1x1x64xf32>
    %18 = arith.subf %10, %17 : vector<1x1x64xf32>
    %c64_i32 = arith.constant 64 : i32
    %19 = arith.muli %arg1, %c64_i32 : i32
    %20 = tpu.iota {dimensions = array<i32: 2>} : vector<1x1x64xi32>
    %21 = vector.broadcast %19 : i32 to vector<1x1x64xi32>
    %22 = arith.addi %21, %20 : vector<1x1x64xi32>
    %c255_i32 = arith.constant 255 : i32
    %23 = vector.broadcast %c255_i32 : i32 to vector<1x1x64xi32>
    %24 = arith.cmpi ne, %1, %23 : vector<1x1x64xi32>
    %c64_i32_8 = arith.constant 64 : i32
    %25 = vector.broadcast %c64_i32_8 : i32 to vector<1x1x64xi32>
    %26 = arith.cmpi slt, %22, %25 : vector<1x1x64xi32>
    %27 = arith.andi %24, %26 : vector<1x1x64xi1>
    %cst_9 = arith.constant 0.000000e+00 : f32
    %28 = vector.broadcast %cst_9 : f32 to vector<1x1x64xf32>
    %29 = arith.select %27, %18, %28 : vector<1x1x64xi1>, vector<1x1x64xf32>
    %c0_10 = arith.constant 0 : index
    %c0_11 = arith.constant 0 : index
    %c0_12 = arith.constant 0 : index
    %30 = vector.load %arg4[%c0_10, %c0_11, %c0_12] : memref<1x1x64xf32, #tpu.memory_space<vmem>>, vector<1x1x64xf32>
    tpu.vector_store %arg4[%c0_10, %c0_11, %c0_12], %29 {strides = array<i32>} : memref<1x1x64xf32, #tpu.memory_space<vmem>>, vector<1x1x64xf32>,
    return
  }
  func.func @transform_0(%arg0: i32, %arg1: i32) -> (i32, i32, i32) {
    %c0_i32 = arith.constant 0 : i32
    %c0_i32_0 = arith.constant 0 : i32
    return %arg0, %c0_i32, %arg1 : i32, i32, i32
  }
  func.func @transform_1(%arg0: i32, %arg1: i32) -> (i32, i32, i32) {
    %c0_i32 = arith.constant 0 : i32
    %c0_i32_0 = arith.constant 0 : i32
    return %arg0, %c0_i32, %arg1 : i32, i32, i32
  }
  func.func @transform_2(%arg0: i32, %arg1: i32) -> (i32, i32, i32) {
    %c0_i32 = arith.constant 0 : i32
    %c0_i32_0 = arith.constant 0 : i32
    return %arg0, %c0_i32, %arg1 : i32, i32, i32
  }
}

</mosaic_0001>

<bundles_post_ra>
// kernel: tpu_custom_call.1
= control target key start
LH: loop header
LB: loop body
LE: loop exit
PB: predicated region body
PF: predicated region fallthrough
CT: control target
= control target key end

     0   :  { %7 = vsyncpa [#allocation3], 0  ;;  %s791_s0 = inlined_call_operand.hbm [shape: f32[2,16,64], index: 0, kind: input, shape index: {}]   ;;  %s792_s1 = inlined_call_operand.hbm [shape: s32[2,1,64], index: 1, kind: input, shape index: {}]   ;;  %s793_s2 = inlined_call_operand.hbm [shape: f32[2,1,64], index: 2, kind: output, shape index: {}]  }
   0x1   :  { %9 = vsyncpa [#allocation3 + $0x1], 0 }
   0x2   :  { %10 = vsyncpa [#allocation6], 0 }
   0x3   :  { %12 = vsyncpa [#allocation6 + $0x1], 0 }
   0x4   :  { %13 = vsyncpa [#allocation4], 0 }
   0x5   :  { %15 = vsyncpa [#allocation4 + $0x1], 0  ;;  %s642_s9 = smov 0   ;;  %s644_s10 = smov 0  }
   0x6   :  { %s646_s11 = smov 0   ;;  %s648_s12 = smov 0  }
   0x7   :  { %s650_s13 = smov 0   ;;  %s652_s14 = smov 0  }
   0x8 LB: > { %s389_s15 = sadd.s32 4294967295, %s623_s14   ;;  %s390_s16 = sadd.s32 4294967294, %s623_s14   ;;  %s623_s14 = sphi %s652_s14, %s21_s14   ;;  %s619_s13 = sphi %s650_s13, %s803_s13   ;;  %s615_s12 = sphi %s648_s12, %s802_s12   ;;  %s611_s11 = sphi %s646_s11, %s801_s11   ;;  %s607_s10 = sphi %s644_s10, %s800_s10   ;;  %s603_s9 = sphi %s642_s9, %s799_s9  }
   0x9   : > { %s33_s17 = sadd.s32 1, %s619_s13  ;;  %s42_s18 = sadd.s32 1, %s611_s11 }
   0xa   : > { %p35_p0 = scmp.ge.s32.totalorder %s33_s17, 2  ;;  %p49_p1 = scmp.ne.s32.totalorder %s611_s11, %s607_s10 }
   0xb   : > { %p50_p2 = scmp.eq.s32.totalorder %s623_s14, 0  ;;  %p55_p3 = scmp.ne.s32.totalorder %s607_s10, %s603_s9 }
   0xc   : > { %s805_s17 = smov (%p35_p0, %s33_s17), 0  ;;  %p56_p5 = scmp.eq.s32.totalorder %s389_s15, 0 }
   0xd   : > { %p683_p4 = por %p50_p2, %p49_p1  ;;  %s37_s20 = ssub.s32 %s619_s13, %s805_s17 }
   0xe   : > { %p109_p6 = scmp.eq.s32.totalorder %s389_s15, 1  ;;  %p40_p7 = scmp.eq.s32.totalorder %s37_s20, 0 }
   0xf   : > { %p689_p8 = por %p56_p5, %p55_p3  ;;  %p115_p10 = scmp.eq.s32.totalorder %s390_s16, 1 }
  0x10   : > { %p693_p9 = por %p109_p6, %p49_p1  ;;  %p392_p12 = scmp.ge.s32.totalorder %s623_s14, 2 }
  0x11   : > { %s698_s23 = scalar_select %p40_p7, %s611_s11, %s42_s18  }
  0x12   : > { %p700_p11 = por %p115_p10, %p55_p3  ;;  %p418_p13 = scmp.lt.s32.totalorder %s623_s14, 2 }
  0x13   : > { %s135_s25 = sand.u32 1, %s611_s11   ;;  %s400_s27 = sshll.u32 %s619_s13, 4 }
  0x14   : > { %s393_s26 = sshll.u32 %s135_s25, 4  ;;  %s145_s30 = scalar_lea.hbm %s791_s0, %s400_s27 }
  0x15   : > { %s139_s3 = scalar_lea.vmem [#allocation2], %s393_s26  ;;  %s146_s5 = sshll.u32 %s145_s30, 4  ;;  %s147_s5 = int_to_ptr.hbm [resolvable:$true] %s146_s5 }
  0x16   : > { %s148_s4 = sshll.u32 %s139_s3, 4  ;;  %p713_p0 = pnand %p418_p13, %p683_p4  ;;  %s149_s4 = int_to_ptr.vmem [resolvable:$true] %s148_s4 }
  0x17   : > { %p396_p1 = scmp.ge.s32.totalorder %s623_s14, 1  ;;  %s136_s7 = scalar_lea.sflag [#allocation3], %s135_s25 }
  0x18   : > { %s625_s8 = smov 128   ;;  %s626_s15 = smov 8  }
  0x19   : > { %410 = dma.hbm_to_vmem [thread:$0]  (!%p713_p0), %s147_s5, 256, %s149_s4, %s136_s7, %s625_s8, %s625_s8, %s626_s15  }
  0x1a   : > { %p174_p2 = scmp.lt.s32.totalorder %s623_s14, 3  ;;  %s165_s20 = scalar_lea.hbm %s792_s1, %s619_s13 }
  0x1b   : > { %s167_s26 = sshll.u32 %s165_s20, 4  ;;  %s161_s19 = scalar_lea.vmem [#allocation5], %s135_s25  ;;  %s168_s26 = int_to_ptr.hbm [resolvable:$true] %s167_s26 }
  0x1c   : > { %p175_p3 = pnand %p396_p1, %p174_p2  ;;  %s169_s27 = sshll.u32 %s161_s19, 4  ;;  %s170_s27 = int_to_ptr.vmem [resolvable:$true] %s169_s27 }
  0x1d   : > { %s159_s28 = scalar_lea.sflag [#allocation6], %s135_s25  ;;  %s728_s29 = sand.u32 (!%p175_p3), 1, %s607_s10  }
  0x1e   : > { %413 = dma.hbm_to_vmem [thread:$0]  (!%p713_p0), %s168_s26, 16, %s170_s27, %s159_s28  }
  0x1f   : > { %178 = sbr.rel (%p175_p3) target bundleno = 99 (0x63), region = 28  ;;  %s397_s30 = sshll.u32 (!%p175_p3), %s728_s29, 4 }
  0x20   : > { %s181_s3 = scalar_lea.sflag (!%p175_p3), [#allocation3], %s728_s29  ;;  %s184_s4 = scalar_lea.vmem (!%p175_p3), [#allocation2], %s397_s30 }
  0x24   : > { %590 = dma.done.wait (%p689_p8), %s181_s3, 256  }
  0x25   : > { %592 = vsyncadd (%p689_p8), %s181_s3, 4294967040  ;;  %s191_s25 = scalar_lea.sflag [#allocation6], %s728_s29  ;;  %s193_s5 = scalar_lea.vmem [#allocation5], %s728_s29 }
  0x26   : > { %594 = dma.done.wait (%p689_p8), %s191_s25, 16  }
  0x27   : > { %596 = vsyncadd (%p689_p8), %s191_s25, 4294967280  ;;  %vm221_vm0 = vcmask 523264   ;;  %v218_v0 = vld [vmem:[%s184_s4] sm:$0xff]  ;;  %v219_v1 = vld [vmem:[%s184_s4 + $0x8] sm:$0xff]  ;;  %v249_v6 = vlaneseq  ;;  %s288_s7 = scalar_lea.hbm %s793_s2, %s615_s12  ;;  %s217_s8 = scalar_lea.vmem [#allocation7], %s728_s29  ;;  %vm276_vm6 = vcmask 516096  }
  0x28   : > { %v222_v2 = vsel %vm221_vm0, %v218_v0, -inf  ;;  %v223_v3 = vsel %vm221_vm0, %v219_v1, -inf  ;;  %v470_v13 = vld [vmem:[%s193_s5] ss:$0 sm:$0xff]  ;;  %s290_s15 = sshll.u32 %s217_s8, 4  ;;  %s292_s16 = sshll.u32 %s288_s7, 4  ;;  %s291_s15 = int_to_ptr.vmem [resolvable:$true] %s290_s15  ;;  %s293_s16 = int_to_ptr.hbm [resolvable:$true] %s292_s16 }
  0x29   : > { %v224_v4 = vmax.f32 %v222_v2, %v223_v3  ;;  %v250_v9 = vshrl.u32 %v249_v6, 7  ;;  %v269_v40 = vand.u32 127, %v249_v6  ;;  %v220_v41 = vld [vmem:[%s193_s5] sm:$0x1]  ;;  %s279_s18 = scalar_lea.sflag [#allocation4], %s728_s29  ;;  %s551_s20 = sshra.s32 %s293_s16, 4  ;;  %s552_s20 = int_to_ptr.hbm [resolvable:$true] %s551_s20 }
  0x2a   : > { %vm272_vm3 = vcmp.ne.s32.totalorder %v220_v41, 255  ;;  %s553_s12 = scalar_lea.hbm %s552_s20, 1  ;;  %s557_s27 = scalar_lea.hbm %s793_s2, 2 }
  0x2b   : > { %v225_v5 = vrot.slane %v224_v4, 4  ;;  %v251_v12 = vadd.s32 8, %v250_v9  ;;  %vm253_vm1 = vcmp.eq.s32.totalorder %v250_v9, %v470_v13  ;;  %vm273_vm4 = vcmp.lt.s32.totalorder %v269_v40, 64  ;;  %p554_p4 = scmp.ne.s32.totalorder %s552_s20, %s553_s12  ;;  %p558_p7 = scmp.lt.s32.totalorder %s552_s20, %s793_s2 }
  0x2c   : > { %v255_v19 = vsel %vm253_vm1, %v218_v0, 0.0  ;;  %vm274_vm5 = vmand %vm272_vm3, %vm273_vm4  ;;  %p559_p8 = scmp.lt.s32.totalorder %s557_s27, %s553_s12 }
  0x2d   : > { %v226_v7 = vmax.f32 %v224_v4, %v225_v5  ;;  %vm254_vm2 = vcmp.eq.s32.totalorder %v251_v12, %v470_v13  ;;  %v257_v21 = vsel %vm221_vm0, %v255_v19, 0.0  ;;  %p555_p5 = pnand %p554_p4, %p693_p9 }
  0x2e   : > { %v256_v20 = vsel %vm254_vm2, %v219_v1, 0.0  ;;  %p560_p10 = por %p559_p8, %p558_p7 }
  0x2f   : > { %v227_v8 = vrot.slane %v226_v7, 2  ;;  %v258_v22 = vsel %vm221_vm0, %v256_v20, 0.0  ;;  %p556_p6 = pneg %p555_p5 }
  0x30   : > { %v259_v24 = vadd.f32 %v258_v22, %v257_v21 }
  0x31   : > { %v228_v10 = vmax.f32 %v226_v7, %v227_v8  ;;  %p561_p13 = pnand %p560_p10, %p556_p6 }
  0x32   : > { %v260_v29 = vrot.slane %v259_v24, 4 }
  0x33   : > { %v229_v11 = vrot.slane %v228_v10, 1 }
  0x34   : > { %v261_v32 = vadd.f32 %v260_v29, %v259_v24 }
  0x35   : > { %v230_v14 = vmax.f32 %v228_v10, %v229_v11 }
  0x36   : > { %v262_v35 = vrot.slane %v261_v32, 2 }
  0x37   : > { %v231_v15 = vsub.f32 %v218_v0, %v230_v14  ;;  %v232_v16 = vsub.f32 %v219_v1, %v230_v14 }
  0x38   : > { %v263_v38 = vadd.f32 %v262_v35, %v261_v32 }
  0x39   : > { %v233_v17 = vmul.f32 1.442695, %v231_v15  ;;  %v235_v18 = vmul.f32 1.442695, %v232_v16 }
  0x3a   : > { %v264_v39 = vrot.slane %v263_v38, 1 }
  0x3b   : > { %471 = vpow2.f32 %v233_v17 }
  0x3c   : > { %473 = vpow2.f32 %v235_v18  ;;  %v265_v44 = vadd.f32 %v264_v39, %v263_v38 }
  0x41   : > { %v472_v23 = vpop.eup %471 }
  0x42   : > { %v474_v25 = vpop.eup %473  ;;  %v237_v26 = vsel %vm221_vm0, %v472_v23, 0.0 }
  0x43   : > { %v238_v27 = vsel %vm221_vm0, %v474_v25, 0.0 }
  0x44   : > { %v239_v28 = vadd.f32 %v238_v27, %v237_v26 }
  0x46   : > { %v240_v30 = vrot.slane %v239_v28, 4 }
  0x48   : > { %v241_v31 = vadd.f32 %v240_v30, %v239_v28 }
  0x4a   : > { %v242_v33 = vrot.slane %v241_v31, 2 }
  0x4c   : > { %v243_v34 = vadd.f32 %v242_v33, %v241_v31 }
  0x4e   : > { %v244_v36 = vrot.slane %v243_v34, 1 }
  0x50   : > { %v245_v37 = vadd.f32 %v244_v36, %v243_v34 }
  0x52   : > { %475 = vlog2.f32 %v245_v37 }
  0x58   : > { %v476_v42 = vpop.eup %475 }
  0x59   : > { %v247_v43 = vmul.f32 0.6931472, %v476_v42 }
  0x5b   : > { %v248_v45 = vadd.f32 %v247_v43, %v230_v14 }
  0x5d   : > { %v266_v46 = vsub.f32 %v248_v45, %v265_v44 }
  0x5f   : > { %v275_v47 = vsel %vm274_vm5, %v266_v46, 0.0 }
  0x60   : > { %277 = vst.msk [vmem:[%s217_s8] sm:$0x1] %vm276_vm6, %v275_v47 }
  0x61   : > { %564 = shalt.err (!%p561_p13)
}
  0x62   : > { %405 = dma.vmem_to_hbm [thread:$0]  (%p693_p9), %s291_s15, 16, %s293_s16, %s279_s18  }
  0x63 PF: > { %s304_s29 = sand.u32 1, %s603_s9   ;;  %p415_p0 = pnand %p392_p12, %p700_p11 }
  0x64   : > { %s305_s3 = scalar_lea.sflag [#allocation4], %s304_s29 }
  0x65   : > { %p416_p1 = pneg %p415_p0 }
  0x67   : > { %598 = dma.done.wait (%p416_p1), %s305_s3, 16  }
  0x68   : > { %600 = vsyncadd (%p416_p1), %s305_s3, 4294967280  ;;  %s21_s14 = sadd.s32 1, %s623_s14   ;;  %s799_s9 = smov %s607_s10 }
  0x69   : > { %p18_p2 = scmp.ge.s32.totalorder %s21_s14, 4   ;;  %s800_s10 = smov %s611_s11 }
  0x6a   : > { %s801_s11 = smov %s698_s23  ;;  %s802_s12 = smov %s619_s13 }
  0x6b   : > { %s803_s13 = smov %s805_s17  ;;  %20 = sbr.rel (!%p18_p2) target bundleno = 8 (0x8), region = 86 }
  0x70   :  { %310 = vsyncpa [#allocation3], 1 }
  0x71   :  { %312 = vsyncpa [#allocation3 + $0x1], 1 }
  0x72   :  { %313 = vsyncpa [#allocation6], 1 }
  0x73   :  { %315 = vsyncpa [#allocation6 + $0x1], 1 }
  0x74   :  { %316 = vsyncpa [#allocation4], 1 }
  0x75   :  { %318 = vsyncpa [#allocation4 + $0x1], 1 }

</bundles_post_ra>
